<compile_context>
chip_gen: v5e
topology: v5e:2x2
jax: 0.10.0
libtpu: 0.0.40
codegen_flags: <defaults>
</compile_context>

<pallas_src>
import jax
import jax.numpy as jnp
from jax.experimental import pallas as pl
from jax.experimental.pallas import tpu as pltpu

# Keep wrapper-side precompute / reference matmuls (and the in-kernel dots,
# which pick up this default at trace time) in true f32 so the fused weights
# match the unfused reference to reassociation-level error only.
jax.config.update("jax_default_matmul_precision", "highest")

T = 80
D_POS = 4            # positional-encoding width
D_X = 7              # data feature width
D_IN = D_X + D_POS   # 11
H1 = 24              # 20-wide hidden layers, zero-padded to a multiple of 8

# ---- lane-packed slab layout (40 x 128 f32 = 20 KB) ----------------------
SLAB_COLS = 128
SLAB_ROWS = 40
ROW_A    = 0      # strip A: rows 0:8
LANE_W1  = 0      #   (8, 24)  e1w[:7,:]  (row 7 zero, lanes 20:24 zero)
LANE_WF  = 32     #   (8, 8)   e3w @ d1w  (fused encoder3 + decoder1)
LANE_W4  = 48     #   (8, 24)  d2w        (lanes 68:72 zero)
ROW_B    = 8      # strip B: rows 8:32
LANE_W2  = 0      #   (24, 8)  e2w        (rows 28:32 zero)
LANE_W5  = 16     #   (24, 8)  d3w        (rows 28:32 zero, lane col 7 zero)
ROW_BIAS = 32     # strip C: rows 32:40 (biases live in row 32)
LANE_B2  = 0      #   (1, 8)   e2b
LANE_BF  = 8      #   (1, 8)   e3b @ d1w + d1b
LANE_B4  = 16     #   (1, 24)  d2b        (lanes 36:40 zero)
LANE_B5  = 48     #   (1, 8)   d3b        (lane col 7 zero)


def encoding(T):
    """Sinusoidal positional encoding, same formula as the PyTorch reference."""
    d = D_POS
    n = 10000.0
    k = jnp.arange(T, dtype=jnp.float32)[:, None]          # (T, 1)
    i = jnp.arange(d // 2, dtype=jnp.float32)[None, :]     # (1, d/2)
    denom = jnp.power(n, 2.0 * i / d)                      # (1, d/2)
    ang = k / denom                                        # (T, d/2)
    P = jnp.zeros((T, d), dtype=jnp.float32)
    P = P.at[:, 0::2].set(jnp.sin(ang))
    P = P.at[:, 1::2].set(jnp.cos(ang))
    return P


def init_params(key):
    """Deterministic init; weights stored as (in, out), biases as (1, out)."""
    dims = [
        ("e1", D_IN, 20), ("e2", 20, 8), ("e3", 8, 4),    # Encoder
        ("d1", 4, 8), ("d2", 8, 20), ("d3", 20, 7),       # Decoder
    ]
    params = []
    for _, din, dout in dims:
        key, kw, kb = jax.random.split(key, 3)
        bound = 1.0 / jnp.sqrt(jnp.float32(din))
        w = jax.random.uniform(kw, (din, dout), jnp.float32, -bound, bound)
        b = jax.random.uniform(kb, (1, dout), jnp.float32, -bound, bound)
        params += [w, b]
    return params


def pack_params(params, posn):
    """Fuse e3/d1, lane-pack weights into one 40x128 slab, and build the
    per-timestep layer-1 bias table (fetched row-by-row at DMA time)."""
    (e1w, e1b, e2w, e2b, e3w, e3b, d1w, d1b, d2w, d2b, d3w, d3b) = params
    wf = e3w @ d1w                       # (8, 8)   fused weight
    bf = e3b @ d1w + d1b                 # (1, 8)   fused bias

    slab = jnp.zeros((SLAB_ROWS, SLAB_COLS), jnp.float32)
    # Strip A (rows 0:8) -- lane-packed 8-row weights.
    slab = slab.at[ROW_A:ROW_A + D_X, LANE_W1:LANE_W1 + 20].set(e1w[:D_X, :])
    slab = slab.at[ROW_A:ROW_A + 8, LANE_WF:LANE_WF + 8].set(wf)
    slab = slab.at[ROW_A:ROW_A + 8, LANE_W4:LANE_W4 + 20].set(d2w)
    # Strip B (rows 8:32) -- lane-packed 20-row weights (zero-padded to 24).
    slab = slab.at[ROW_B:ROW_B + 20, LANE_W2:LANE_W2 + 8].set(e2w)
    slab = slab.at[ROW_B:ROW_B + 20, LANE_W5:LANE_W5 + D_X].set(d3w)
    # Strip C (row 32) -- all biases side-by-side.
    slab = slab.at[ROW_BIAS, LANE_B2:LANE_B2 + 8].set(e2b[0])
    slab = slab.at[ROW_BIAS, LANE_BF:LANE_BF + 8].set(bf[0])
    slab = slab.at[ROW_BIAS, LANE_B4:LANE_B4 + 20].set(d2b[0])
    slab = slab.at[ROW_BIAS, LANE_B5:LANE_B5 + D_X].set(d3b[0])

    # Per-timestep layer-1 bias:  posn @ e1w[7:] + e1b  (the tiled t_bar term
    # folded in).  Shape (T, 1, 128) so a (1, 1, 128) block = one row per step.
    b1 = posn @ e1w[D_X:, :] + e1b       # (T, 20)
    b1_tab = jnp.zeros((T, 1, SLAB_COLS), jnp.float32).at[:, 0, 0:20].set(b1)
    return slab, b1_tab


def autoencoder_kernel(t_ref, x_ref, b1_ref, slab_ref, out_ref):
    # The timestep is only consumed by b1_tab's index_map (DMA-time gather).
    del t_ref
    x = x_ref[0]                                              # (n, 8); lane 7 zero
    b1 = b1_ref[0, :, 0:H1]                                   # (1, 24); lanes 20:24 zero

    # Layer 1: x @ W1x + b1[t]   (t_bar contribution pre-folded into b1_tab).
    w1 = slab_ref[ROW_A:ROW_A + 8, LANE_W1:LANE_W1 + H1]      # (8, 24)
    h1 = jnp.maximum(
        jnp.dot(x, w1, preferred_element_type=jnp.float32) + b1, 0.0)   # (n, 24)

    # Encoder linear2 + ReLU.
    w2 = slab_ref[ROW_B:ROW_B + H1, LANE_W2:LANE_W2 + 8]      # (24, 8)
    b2 = slab_ref[ROW_BIAS:ROW_BIAS + 1, LANE_B2:LANE_B2 + 8]
    h2 = jnp.maximum(
        jnp.dot(h1, w2, preferred_element_type=jnp.float32) + b2, 0.0)  # (n, 8)

    # Fused encoder linear3 + decoder linear1 (no ReLU in between), then ReLU.
    wf = slab_ref[ROW_A:ROW_A + 8, LANE_WF:LANE_WF + 8]       # (8, 8)
    bf = slab_ref[ROW_BIAS:ROW_BIAS + 1, LANE_BF:LANE_BF + 8]
    g1 = jnp.maximum(
        jnp.dot(h2, wf, preferred_element_type=jnp.float32) + bf, 0.0)  # (n, 8)

    # Decoder linear2 + ReLU.
    w4 = slab_ref[ROW_A:ROW_A + 8, LANE_W4:LANE_W4 + H1]      # (8, 24)
    b4 = slab_ref[ROW_BIAS:ROW_BIAS + 1, LANE_B4:LANE_B4 + H1]
    g2 = jnp.maximum(
        jnp.dot(g1, w4, preferred_element_type=jnp.float32) + b4, 0.0)  # (n, 24)

    # Decoder linear3 (no activation). Output lane 7 is exactly zero by packing.
    w5 = slab_ref[ROW_B:ROW_B + H1, LANE_W5:LANE_W5 + 8]      # (24, 8)
    b5 = slab_ref[ROW_BIAS:ROW_BIAS + 1, LANE_B5:LANE_B5 + 8]
    out_ref[0] = jnp.dot(g2, w5, preferred_element_type=jnp.float32) + b5


def autoencoder_forward_batched(x, t, slab, b1_tab):
    """Batched forward over B independent (x, t) pairs in ONE pallas_call.

    x: (B, n, 7) f32, t: (B,) int, slab: (40,128), b1_tab: (T,1,128).
    Returns (B, n, 7) f32 with out[b] == Autoencoder(x[b], t[b], n).
    """
    B, n, _ = x.shape
    x_pad = jnp.pad(x, ((0, 0), (0, 0), (0, 8 - D_X)))        # (B, n, 8)
    t_arr = jnp.clip(jnp.asarray(t, jnp.int32).reshape(B), 0, T - 1)

    grid_spec = pltpu.PrefetchScalarGridSpec(
        num_scalar_prefetch=1,                                 # t vector -> SMEM
        grid=(B,),
        in_specs=[
            # per-step sample block
            pl.BlockSpec((1, n, 8), lambda b, t_s: (b, 0, 0)),
            # one bias-table row per step, gathered at DMA time via t[b]
            pl.BlockSpec((1, 1, SLAB_COLS), lambda b, t_s: (t_s[b], 0, 0)),
            # parameter slab: constant index_map -> DMA'd once, VMEM-resident
            pl.BlockSpec((SLAB_ROWS, SLAB_COLS), lambda b, t_s: (0, 0)),
        ],
        out_specs=pl.BlockSpec((1, n, 8), lambda b, t_s: (b, 0, 0)),
    )
    out = pl.pallas_call(
        autoencoder_kernel,
        out_shape=jax.ShapeDtypeStruct((B, n, 8), jnp.float32),
        grid_spec=grid_spec,
        compiler_params=pltpu.CompilerParams(
            dimension_semantics=("parallel",)),                # shards over v7x's 2 TCs
    )(t_arr, x_pad, slab, b1_tab) if False else pl.pallas_call(
        autoencoder_kernel,
        out_shape=jax.ShapeDtypeStruct((B, n, 8), jnp.float32),
        grid_spec=grid_spec,
        compiler_params=pltpu.CompilerParams(
            dimension_semantics=("parallel",)),
    )(t_arr, x_pad, b1_tab, slab)
    return out[:, :, :D_X]


def autoencoder_forward(x, t, slab, b1_tab):
    """Single (x, t) pair -- module-equivalent convenience wrapper."""
    out = autoencoder_forward_batched(x[None], jnp.asarray([t]), slab, b1_tab)
    return out[0]


def reference_forward(x, t, params, posn):
    """Pure-JAX reference (original, unfused math) for a sanity check."""
    n = x.shape[0]
    tbar = posn[t][None, :]
    (e1w, e1b, e2w, e2b, e3w, e3b, d1w, d1b, d2w, d2b, d3w, d3b) = params
    h = jnp.concatenate([x, jnp.tile(tbar, (n, 1))], axis=1)
    h1 = jax.nn.relu(h @ e1w + e1b)
    h2 = jax.nn.relu(h1 @ e2w + e2b)
    z = h2 @ e3w + e3b
    g1 = jax.nn.relu(z @ d1w + d1b)
    g2 = jax.nn.relu(g1 @ d2w + d2b)
    return g2 @ d3w + d3b


if __name__ == "__main__":
    key = jax.random.PRNGKey(0)
    k_param, k_x, k_t = jax.random.split(key, 3)

    posn = encoding(T)                                   # (80, 4)
    params = init_params(k_param)
    slab, b1_tab = jax.block_until_ready(pack_params(params, posn))

    n = 8        # samples per pair (rows)
    B = 16       # batch of (x, t) pairs processed in one pallas_call
    x = jax.random.normal(k_x, (B, n, D_X), dtype=jnp.float32)   # (16, 8, 7)
    t = jax.random.randint(k_t, (B,), 0, T, dtype=jnp.int32)     # (16,)

    out = jax.block_until_ready(autoencoder_forward_batched(x, t, slab, b1_tab))
    assert out.shape == (B, n, D_X)

    ref = jax.vmap(lambda xb, tb: reference_forward(xb, tb, params, posn))(x, t)
    assert jnp.allclose(out, ref, atol=1e-4, rtol=1e-4), "batched mismatch vs JAX reference"

    # Module-equivalent single-pair call (forward(x, t, n)).
    out1 = jax.block_until_ready(autoencoder_forward(x[0], int(t[0]), slab, b1_tab))
    assert out1.shape == (n, D_X)
    assert jnp.allclose(out1, ref[0], atol=1e-4, rtol=1e-4), "single-pair mismatch vs JAX reference"

    print("KERNEL_OK")
</pallas_src>

<mosaic_0001>
module attributes {stable_mosaic.version = 11 : i64} {
  func.func @autoencoder_kernel(%arg0: i32, %arg1: memref<16xi32, #tpu.memory_space<smem>>, %arg2: memref<1x8x8xf32, #tpu.memory_space<vmem>>, %arg3: memref<1x1x128xf32, #tpu.memory_space<vmem>>, %arg4: memref<40x128xf32, #tpu.memory_space<vmem>>, %arg5: memref<1x8x8xf32, #tpu.memory_space<vmem>>) attributes {dimension_semantics = [#tpu.dimension_semantics<parallel>], iteration_bounds = array<i64: 16>, scalar_prefetch = 1 : i64, scratch_operands = 0 : i64, tpu.core_type = #tpu.core_type<tc>, window_params = [{transform_indices = @transform_0, window_bounds = array<i64: 1, 8, 8>}, {transform_indices = @transform_1, window_bounds = array<i64: 1, 1, 128>}, {pipeline_mode = #tpu.pipeline_mode<synchronous>, transform_indices = @transform_2, window_bounds = array<i64: 40, 128>}, {transform_indices = @transform_3, window_bounds = array<i64: 1, 8, 8>}]} {
    %c0 = arith.constant 0 : index
    %c0_0 = arith.constant 0 : index
    %c0_1 = arith.constant 0 : index
    %0 = vector.load %arg2[%c0, %c0_0, %c0_1] : memref<1x8x8xf32, #tpu.memory_space<vmem>>, vector<1x8x8xf32>
    %1 = vector.shape_cast %0 : vector<1x8x8xf32> to vector<8x8xf32>
    %c0_2 = arith.constant 0 : index
    %c0_3 = arith.constant 0 : index
    %c0_4 = arith.constant 0 : index
    %2 = vector.load %arg3[%c0_2, %c0_3, %c0_4] : memref<1x1x128xf32, #tpu.memory_space<vmem>>, vector<1x1x24xf32>
    %3 = vector.shape_cast %2 : vector<1x1x24xf32> to vector<1x24xf32>
    %c0_5 = arith.constant 0 : index
    %c0_6 = arith.constant 0 : index
    %4 = vector.load %arg4[%c0_5, %c0_6] : memref<40x128xf32, #tpu.memory_space<vmem>>, vector<8x24xf32>
    %cst = arith.constant dense<0.000000e+00> : vector<8x24xf32>
    %5 = tpu.matmul %1, %4, %cst {dimension_numbers = #tpu.dot_dimension_numbers<[1], [0], [0], [1], [0, 0, 1, 1], [], []>, precision = #tpu.contract_precision<fp32>} : vector<8x8xf32>, vector<8x24xf32>, vector<8x24xf32> -> vector<8x24xf32>
    %6 = vector.broadcast %3 : vector<1x24xf32> to vector<8x24xf32>
    %7 = arith.addf %5, %6 : vector<8x24xf32>
    %cst_7 = arith.constant 0.000000e+00 : f32
    %8 = vector.broadcast %cst_7 : f32 to vector<8x24xf32>
    %9 = arith.maximumf %7, %8 : vector<8x24xf32>
    %c8 = arith.constant 8 : index
    %c0_8 = arith.constant 0 : index
    %10 = vector.load %arg4[%c8, %c0_8] : memref<40x128xf32, #tpu.memory_space<vmem>>, vector<24x8xf32>
    %c32 = arith.constant 32 : index
    %c0_9 = arith.constant 0 : index
    %11 = vector.load %arg4[%c32, %c0_9] : memref<40x128xf32, #tpu.memory_space<vmem>>, vector<1x8xf32>
    %cst_10 = arith.constant dense<0.000000e+00> : vector<8x8xf32>
    %12 = tpu.matmul %9, %10, %cst_10 {dimension_numbers = #tpu.dot_dimension_numbers<[1], [0], [0], [1], [0, 0, 1, 1], [], []>, precision = #tpu.contract_precision<fp32>} : vector<8x24xf32>, vector<24x8xf32>, vector<8x8xf32> -> vector<8x8xf32>
    %13 = vector.broadcast %11 : vector<1x8xf32> to vector<8x8xf32>
    %14 = arith.addf %12, %13 : vector<8x8xf32>
    %cst_11 = arith.constant 0.000000e+00 : f32
    %15 = vector.broadcast %cst_11 : f32 to vector<8x8xf32>
    %16 = arith.maximumf %14, %15 : vector<8x8xf32>
    %c0_12 = arith.constant 0 : index
    %c32_13 = arith.constant 32 : index
    %17 = vector.load %arg4[%c0_12, %c32_13] : memref<40x128xf32, #tpu.memory_space<vmem>>, vector<8x8xf32>
    %c32_14 = arith.constant 32 : index
    %c8_15 = arith.constant 8 : index
    %18 = vector.load %arg4[%c32_14, %c8_15] : memref<40x128xf32, #tpu.memory_space<vmem>>, vector<1x8xf32>
    %cst_16 = arith.constant dense<0.000000e+00> : vector<8x8xf32>
    %19 = tpu.matmul %16, %17, %cst_16 {dimension_numbers = #tpu.dot_dimension_numbers<[1], [0], [0], [1], [0, 0, 1, 1], [], []>, precision = #tpu.contract_precision<fp32>} : vector<8x8xf32>, vector<8x8xf32>, vector<8x8xf32> -> vector<8x8xf32>
    %20 = vector.broadcast %18 : vector<1x8xf32> to vector<8x8xf32>
    %21 = arith.addf %19, %20 : vector<8x8xf32>
    %cst_17 = arith.constant 0.000000e+00 : f32
    %22 = vector.broadcast %cst_17 : f32 to vector<8x8xf32>
    %23 = arith.maximumf %21, %22 : vector<8x8xf32>
    %c0_18 = arith.constant 0 : index
    %c48 = arith.constant 48 : index
    %24 = vector.load %arg4[%c0_18, %c48] : memref<40x128xf32, #tpu.memory_space<vmem>>, vector<8x24xf32>
    %c32_19 = arith.constant 32 : index
    %c16 = arith.constant 16 : index
    %25 = vector.load %arg4[%c32_19, %c16] : memref<40x128xf32, #tpu.memory_space<vmem>>, vector<1x24xf32>
    %cst_20 = arith.constant dense<0.000000e+00> : vector<8x24xf32>
    %26 = tpu.matmul %23, %24, %cst_20 {dimension_numbers = #tpu.dot_dimension_numbers<[1], [0], [0], [1], [0, 0, 1, 1], [], []>, precision = #tpu.contract_precision<fp32>} : vector<8x8xf32>, vector<8x24xf32>, vector<8x24xf32> -> vector<8x24xf32>
    %27 = vector.broadcast %25 : vector<1x24xf32> to vector<8x24xf32>
    %28 = arith.addf %26, %27 : vector<8x24xf32>
    %cst_21 = arith.constant 0.000000e+00 : f32
    %29 = vector.broadcast %cst_21 : f32 to vector<8x24xf32>
    %30 = arith.maximumf %28, %29 : vector<8x24xf32>
    %c8_22 = arith.constant 8 : index
    %c16_23 = arith.constant 16 : index
    %31 = vector.load %arg4[%c8_22, %c16_23] : memref<40x128xf32, #tpu.memory_space<vmem>>, vector<24x8xf32>
    %c32_24 = arith.constant 32 : index
    %c48_25 = arith.constant 48 : index
    %32 = vector.load %arg4[%c32_24, %c48_25] : memref<40x128xf32, #tpu.memory_space<vmem>>, vector<1x8xf32>
    %cst_26 = arith.constant dense<0.000000e+00> : vector<8x8xf32>
    %33 = tpu.matmul %30, %31, %cst_26 {dimension_numbers = #tpu.dot_dimension_numbers<[1], [0], [0], [1], [0, 0, 1, 1], [], []>, precision = #tpu.contract_precision<fp32>} : vector<8x24xf32>, vector<24x8xf32>, vector<8x8xf32> -> vector<8x8xf32>
    %34 = vector.broadcast %32 : vector<1x8xf32> to vector<8x8xf32>
    %35 = arith.addf %33, %34 : vector<8x8xf32>
    %c0_27 = arith.constant 0 : index
    %c0_28 = arith.constant 0 : index
    %c0_29 = arith.constant 0 : index
    %36 = vector.load %arg5[%c0_27, %c0_28, %c0_29] : memref<1x8x8xf32, #tpu.memory_space<vmem>>, vector<1x8x8xf32>
    %37 = vector.shape_cast %36 : vector<1x8x8xf32> to vector<8x8xf32>
    %38 = vector.shape_cast %35 : vector<8x8xf32> to vector<1x8x8xf32>
    tpu.vector_store %arg5[%c0_27, %c0_28, %c0_29], %38 {strides = array<i32>} : memref<1x8x8xf32, #tpu.memory_space<vmem>>, vector<1x8x8xf32>,
    return
  }
  func.func @transform_0(%arg0: i32, %arg1: memref<16xi32, #tpu.memory_space<smem>>) -> (i32, i32, i32) {
    %c0_i32 = arith.constant 0 : i32
    %c0_i32_0 = arith.constant 0 : i32
    %c0_i32_1 = arith.constant 0 : i32
    return %arg0, %c0_i32, %c0_i32_0 : i32, i32, i32
  }
  func.func @transform_1(%arg0: i32, %arg1: memref<16xi32, #tpu.memory_space<smem>>) -> (i32, i32, i32) {
    %0 = arith.index_cast %arg0 : i32 to index
    %1 = memref.load %arg1[%0] : memref<16xi32, #tpu.memory_space<smem>>
    %c0_i32 = arith.constant 0 : i32
    %c0_i32_0 = arith.constant 0 : i32
    %c0_i32_1 = arith.constant 0 : i32
    return %1, %c0_i32, %c0_i32_0 : i32, i32, i32
  }
  func.func @transform_2(%arg0: i32, %arg1: memref<16xi32, #tpu.memory_space<smem>>) -> (i32, i32) {
    %c0_i32 = arith.constant 0 : i32
    %c0_i32_0 = arith.constant 0 : i32
    %c0_i32_1 = arith.constant 0 : i32
    return %c0_i32, %c0_i32_0 : i32, i32
  }
  func.func @transform_3(%arg0: i32, %arg1: memref<16xi32, #tpu.memory_space<smem>>) -> (i32, i32, i32) {
    %c0_i32 = arith.constant 0 : i32
    %c0_i32_0 = arith.constant 0 : i32
    %c0_i32_1 = arith.constant 0 : i32
    return %arg0, %c0_i32, %c0_i32_0 : i32, i32, i32
  }
}

</mosaic_0001>

<bundles_post_ra>
// kernel: tpu_custom_call.1
= control target key start
LH: loop header
LB: loop body
LE: loop exit
PB: predicated region body
PF: predicated region fallthrough
CT: control target
= control target key end

     0   :  { %s1148_s18 = smov [#allocation3]   ;;  %s1260_s0 = inlined_call_operand.vmem [shape: s32[16], index: 0, kind: input, shape index: {}]   ;;  %s1261_s1 = inlined_call_operand.vmem [shape: f32[16,8,8], index: 1, kind: input, shape index: {}]   ;;  %s1262_s2 = inlined_call_operand.vmem [shape: f32[80,1,128], index: 2, kind: input, shape index: {}]   ;;  %s1263_s3 = inlined_call_operand.vmem [shape: f32[40,128], index: 3, kind: input, shape index: {}]   ;;  %s1264_s4 = inlined_call_operand.vmem [shape: f32[16,8,8], index: 4, kind: output, shape index: {}]  }
   0x1   :  { %s10_s17 = sshll.u32 %s1260_s0, 4  ;;  %s11_s17 = int_to_ptr.vmem [resolvable:$true] %s10_s17 }
   0x2   :  { %13 = dma.vmem_to_smem %s11_s17, 16, %s1148_s18, [#allocation2] }
   0x3   :  { %1142 = dma.done.wait [#allocation2], 16 }
   0x4   :  { %1143 = vsyncadd [#allocation2], 4294967280 }
   0x5   :  { %16 = sfence }
   0x6   :  { %s1181_s19 = smov 0  }
   0x7 LB: > { %s1102_s20 = sadd.s32 4294967295, %s1146_s19   ;;  %p1106_p0 = scmp.ge.s32.totalorder %s1146_s19, 1  ;;  %s1146_s19 = sphi %s1181_s19, %s22_s19  }
   0x8   : > { %p157_p1 = scmp.lt.s32.totalorder %s1146_s19, 17 }
   0xa   : > { %p158_p2 = pnand %p1106_p0, %p157_p1 }
   0xb   : > { %p183_p3 = scmp.lt.s32.totalorder (!%p158_p2), %s1102_s20, 15  ;;  %s187_s22 = sld [smem:[#allocation3 + %s1102_s20]] (!%p158_p2) }
   0xc   : > { %161 = sbr.rel (%p158_p2) target bundleno = 787 (0x313), region = 32  ;;  %s1149_s30 = smov (!%p158_p2), 96  }
   0xd   : > { %s1150_s13 = smov (!%p158_p2), 80   ;;  %s1151_s16 = smov (!%p158_p2), 120  }
   0xe   : > { %s1152_s17 = smov (!%p158_p2), 112  }
  0x11   : > { %v1192_v0 = vld [vmem:[%s1263_s3] sm:$0xff]  ;;  %s1266_s20 = smov (!%p183_p3, %s1102_s20), 15  ;;  %vm202_vm0 = vcmask 64512   ;;  %p188_p4 = scmp.lt.s32.totalorder %s187_s22, 79  ;;  %v1215_v13 = vld [vmem:[%s1263_s3 + $0x18] sm:$0xff]  ;;  %v1221_v15 = vld [vmem:[%s1263_s3 + $0x10] sm:$0xff] }
  0x12   : > { %v221_v1 = vand.u32 4294901760, %v1192_v0  ;;  %s1107_s23 = sshll.u32 %s1266_s20, 3  ;;  %536 = vrot.lane.b32.xlu0 %v1192_v0, %s1149_s30  ;;  %v375_v14 = vand.u32 4294901760, %v1215_v13  ;;  %v377_v17 = vand.u32 4294901760, %v1221_v15  ;;  %v1228_v18 = vld [vmem:[%s1263_s3 + $0x8] sm:$0xff]  ;;  %vm358_vm1 = vcmask 195584   ;;  %693 = vrot.lane.b32.xlu1 %v1192_v0, %s1150_s13 }
  0x13   : > { %s186_s26 = scalar_lea.vmem %s1261_s1, %s1107_s23  ;;  %s1268_s22 = smov (!%p188_p4, %s187_s22), 79  ;;  %v379_v21 = vand.u32 4294901760, %v1228_v18  ;;  %v1125_v52 = vld [vmem:[%s1263_s3 + $0x20] ss:$0 sm:$0xff]  ;;  %856 = vrot.lane.b32.xlu2 %v1215_v13, %s1152_s17 }
  0x14   : > { %v248_v2 = vsub.f32 %v1192_v0, %v221_v1  ;;  %222 = vmatpush.msra.mxu0 %v221_v1  ;;  %298 = vmatpush.msra.mxu3 %v221_v1  ;;  %v196_v4 = vld [vmem:[%s186_s26] sm:$0xff]  ;;  %s190_s29 = scalar_lea.vmem %s1262_s2, %s1268_s22  ;;  %v404_v16 = vsub.f32 %v1215_v13, %v375_v14  ;;  %v410_v20 = vsub.f32 %v1221_v15, %v377_v17  ;;  %s195_s21 = scalar_lea.vmem %s1264_s4, %s1107_s23 }
  0x15   : > { %v204_v5 = vsel %vm202_vm0, %v196_v4, 0  ;;  %v416_v24 = vsub.f32 %v1228_v18, %v379_v21  ;;  %v1124_v31 = vld [vmem:[%s190_s29] ss:$0 sm:$0xff] }
  0x16   : > { %275 = vmatpush.msra.mxu2 %v248_v2  ;;  %v249_v3 = vand.u32 4294901760, %v248_v2  ;;  %v223_v7 = vand.u32 4294901760, %v204_v5  ;;  %v405_v19 = vand.u32 4294901760, %v404_v16  ;;  %v411_v23 = vand.u32 4294901760, %v410_v20 }
  0x17   : > { %v417_v27 = vand.u32 4294901760, %v416_v24 }
  0x18   : > { %324 = vmatpush.msrb.mxu0 %v249_v3  ;;  %v250_v6 = vsub.f32 %v248_v2, %v249_v3  ;;  %v224_v9 = vsub.f32 %v204_v5, %v223_v7  ;;  %376 = vmatpush.msrb.mxu2 %v375_v14  ;;  %v406_v22 = vsub.f32 %v404_v16, %v405_v19 }
  0x19   : > { %v412_v26 = vsub.f32 %v410_v20, %v411_v23  ;;  %v418_v29 = vsub.f32 %v416_v24, %v417_v27 }
  0x1a   : > { %v251_v8 = vand.u32 4294901760, %v250_v6  ;;  %278 = vmatmul.f32.vlgmr.msra.gmra.mxu2 %v224_v9  ;;  %v225_v10 = vand.u32 4294901760, %v224_v9  ;;  %v407_v25 = vand.u32 4294901760, %v406_v22  ;;  %540 = vrot.lane.b32.xlu0 %v1125_v52, %s1151_s16 }
  0x1b   : > { %378 = vmatpush.msrb.mxu2 %v377_v17  ;;  %v413_v28 = vand.u32 4294901760, %v412_v26  ;;  %v419_v30 = vand.u32 4294901760, %v418_v29  ;;  %696 = vrot.lane.b32.xlu1 %v1125_v52, %s1152_s17 }
  0x1c   : > { %252 = vmatpush.msra.mxu1 %v251_v8  ;;  %v226_v11 = vsub.f32 %v224_v9, %v225_v10  ;;  %302 = vmatmul.f32.vlgmr.msra.gmra.mxu3 %v225_v10 }
  0x1d   : > { %254 = vmatmul.f32.vlgmr.msra.gmra.mxu1 %v223_v7  ;;  %380 = vmatpush.msrb.mxu2 %v379_v21 }
  0x1e   : > { %346 = vmatpush.msrb.mxu1 %v221_v1  ;;  %v227_v12 = vand.u32 4294901760, %v226_v11  ;;  %408 = vmatpush.msrb.mxu3 %v407_v25 }
  0x1f   : > { %496 = vmatpush.msra.mxu2 %v405_v19  ;;  %854 = vrot.lane.b32.xlu2 %v1221_v15, %s1152_s17 }
  0x20   : > { %228 = vmatmul.f32.vlgmr.msra.gmra.mxu0 %v227_v12  ;;  %468 = vmatpush.msra.mxu1 %v375_v14 }
  0x21   : > { %441 = vmatpush.msra.mxu0 %v404_v16  ;;  %500 = vmatpush.msra.mxu2 %v411_v23 }
  0x22   : > { %470 = vmatpush.msra.mxu1 %v377_v17  ;;  %414 = vmatpush.msrb.mxu3 %v413_v28 }
  0x23   : > { %444 = vmatpush.msra.mxu0 %v410_v20  ;;  %504 = vmatpush.msra.mxu2 %v417_v27 }
  0x24   : > { %472 = vmatpush.msra.mxu1 %v379_v21  ;;  %420 = vmatpush.msrb.mxu3 %v419_v30 }
  0x25   : > { %348 = vmatmul.f32.vlgmr.msrb.gmra.mxu1 %v223_v7  ;;  %447 = vmatpush.msra.mxu0 %v416_v24 }
  0x26   : > { %524 = vmatpush.msra.mxu3 %v375_v14  ;;  %852 = vrot.lane.b32.xlu0 %v1228_v18, %s1152_s17 }
  0x27   : > { %861 = vrot.lane.b32.xlu1 %v1125_v52, %s1150_s13 }
  0x28   : > { %326 = vmatmul.f32.vlgmr.msrb.gmra.mxu0 %v223_v7  ;;  %526 = vmatpush.msra.mxu3 %v377_v17 }
  0x2a   : > { %528 = vmatpush.msra.mxu3 %v379_v21 }
  0x6d   : > { %v857_v24 = vpop.permute.xlu2 %856 }
  0x6e   : > { %v880_v26 = vand.u32 4294901760, %v857_v24 }
  0x70   : > { %v909_v28 = vsub.f32 %v857_v24, %v880_v26 }
  0x84   : > { %v537_v51 = vpop.permute.xlu0 %536  ;;  %v694_v14 = vpop.permute.xlu1 %693 }
  0x85   : > { %v561_v53 = vand.u32 4294901760, %v537_v51  ;;  %v717_v16 = vand.u32 4294901760, %v694_v14 }
  0x87   : > { %v588_v54 = vsub.f32 %v537_v51, %v561_v53  ;;  %562 = vmatpush.msrb.mxu0 %v561_v53  ;;  %v744_v17 = vsub.f32 %v694_v14, %v717_v16 }
  0x89   : > { %v589_v55 = vand.u32 4294901760, %v588_v54  ;;  %v745_v19 = vand.u32 4294901760, %v744_v17 }
  0x8b   : > { %v590_v56 = vsub.f32 %v588_v54, %v589_v55  ;;  %v746_v20 = vsub.f32 %v744_v17, %v745_v19 }
  0x8c   : > { %v541_v18 = vpop.permute.xlu0 %540 }
  0x8d   : > { %v591_v57 = vand.u32 4294901760, %v590_v56  ;;  %v747_v21 = vand.u32 4294901760, %v746_v20 }
  0x8f   : > { %592 = vmatpush.msrb.mxu1 %v591_v57  ;;  %v697_v57 = vpop.permute.xlu1 %696 }
  0x99   : > { %v862_v14 = vpop.permute.xlu1 %861 }
  0x9a   : > { %v255_v32 = vpop.f32.mrf.mxu1 }
  0x9d   : > { %v229_v33 = vpop.f32.mrf.mxu0  ;;  %v279_v35 = vpop.f32.mrf.mxu2 }
  0x9e   : > { %v230_v34 = vadd.f32 %v1124_v31, %v229_v33  ;;  %v910_v31 = vand.u32 4294901760, %v909_v28 }
  0x9f   : > { %v303_v37 = vpop.f32.mrf.mxu3 }
  0xa0   : > { %v256_v36 = vadd.f32 %v255_v32, %v230_v34  ;;  %v911_v34 = vsub.f32 %v909_v28, %v910_v31 }
  0xa2   : > { %v280_v38 = vadd.f32 %v279_v35, %v256_v36  ;;  %v349_v41 = vpop.f32.mrf.mxu1 }
  0xa4   : > { %v304_v39 = vadd.f32 %v303_v37, %v280_v38  ;;  %v912_v37 = vand.u32 4294901760, %v911_v34 }
  0xa5   : > { %v327_v40 = vpop.f32.mrf.mxu0 }
  0xa6   : > { %v328_v42 = vadd.f32 %v327_v40, %v304_v39 }
  0xa8   : > { %v350_v43 = vadd.f32 %v349_v41, %v328_v42 }
  0xaa   : > { %v352_v44 = vmax.f32 %v350_v43, 0.0 }
  0xac   : > { %v360_v45 = vsel %vm358_vm1, %v352_v44, 0 }
  0xad   : > { %v381_v46 = vand.u32 4294901760, %v360_v45 }
  0xaf   : > { %v382_v47 = vsub.f32 %v360_v45, %v381_v46  ;;  %422 = vmatmul.f32.vlgmr.msrb.gmra.mxu3 %v381_v46  ;;  %v855_v45 = vpop.permute.xlu2 %854 }
  0xb0   : > { %638 = vmatpush.msrb.mxu3 %v561_v53 }
  0xb1   : > { %450 = vmatmul.f32.vlgmr.msra.gmra.mxu0 %v382_v47  ;;  %v383_v48 = vand.u32 4294901760, %v382_v47 }
  0xb2   : > { %664 = vmatpush.msra.mxu0 %v589_v55 }
  0xb3   : > { %476 = vmatmul.f32.vlgmr.msra.gmra.mxu1 %v383_v48  ;;  %v384_v49 = vsub.f32 %v382_v47, %v383_v48  ;;  %v882_v47 = vand.u32 4294901760, %v855_v45 }
  0xb4   : > { %686 = vmatpush.msra.mxu1 %v561_v53 }
  0xb5   : > { %v385_v50 = vand.u32 4294901760, %v384_v49  ;;  %v915_v49 = vsub.f32 %v855_v45, %v882_v47 }
  0xb7   : > { %386 = vmatmul.f32.vlgmr.msrb.gmra.mxu2 %v385_v50  ;;  %530 = vmatmul.f32.vlgmr.msra.gmra.mxu3 %v381_v46  ;;  %v916_v51 = vand.u32 4294901760, %v915_v49 }
  0xb8   : > { %615 = vmatpush.msrb.mxu2 %v588_v54  ;;  %748 = vmatpush.msra.mxu3 %v747_v21 }
  0xb9   : > { %v917_v53 = vsub.f32 %v915_v49, %v916_v51 }
  0xbb   : > { %v918_v55 = vand.u32 4294901760, %v917_v53 }
  0xbf   : > { %506 = vmatmul.f32.vlgmr.msra.gmra.mxu2 %v381_v46  ;;  %v853_v46 = vpop.permute.xlu0 %852 }
  0xc0   : > { %718 = vmatpush.msra.mxu2 %v717_v16  ;;  %v884_v48 = vand.u32 4294901760, %v853_v46 }
  0xc2   : > { %v921_v50 = vsub.f32 %v853_v46, %v884_v48 }
 0x12e   : > { %v451_v62 = vpop.f32.mrf.mxu0 }
 0x130   : > { %v477_v0 = vpop.f32.mrf.mxu1 }
 0x132   : > { %v423_v58 = vpop.f32.mrf.mxu3 }
 0x13a   : > { %v387_v59 = vpop.f32.mrf.mxu2  ;;  %v531_v4 = vpop.f32.mrf.mxu3 }
 0x13b   : > { %v388_v60 = vadd.f32 %v1125_v52, %v387_v59  ;;  %v922_v52 = vand.u32 4294901760, %v921_v50 }
 0x13d   : > { %v424_v61 = vadd.f32 %v423_v58, %v388_v60  ;;  %v923_v54 = vsub.f32 %v921_v50, %v922_v52 }
 0x13f   : > { %v452_v63 = vadd.f32 %v451_v62, %v424_v61  ;;  %v924_v56 = vand.u32 4294901760, %v923_v54 }
 0x141   : > { %v478_v1 = vadd.f32 %v477_v0, %v452_v63 }
 0x142   : > { %v507_v2 = vpop.f32.mrf.mxu2 }
 0x143   : > { %v508_v3 = vadd.f32 %v507_v2, %v478_v1 }
 0x145   : > { %v532_v5 = vadd.f32 %v531_v4, %v508_v3 }
 0x147   : > { %v534_v6 = vmax.f32 %v532_v5, 0.0 }
 0x149   : > { %v544_v7 = vsel %vm202_vm0, %v534_v6, 0 }
 0x14a   : > { %v563_v8 = vand.u32 4294901760, %v544_v7 }
 0x14c   : > { %v564_v9 = vsub.f32 %v544_v7, %v563_v8  ;;  %594 = vmatmul.f32.vlgmr.msrb.gmra.mxu1 %v563_v8 }
 0x14d   : > { %794 = vmatpush.msrb.mxu1 %v717_v16 }
 0x14e   : > { %618 = vmatmul.f32.vlgmr.msrb.gmra.mxu2 %v564_v9  ;;  %v565_v10 = vand.u32 4294901760, %v564_v9 }
 0x14f   : > { %820 = vmatpush.msrb.mxu2 %v745_v19 }
 0x150   : > { %642 = vmatmul.f32.vlgmr.msrb.gmra.mxu3 %v565_v10  ;;  %v566_v11 = vsub.f32 %v564_v9, %v565_v10 }
 0x151   : > { %842 = vmatpush.msrb.mxu3 %v717_v16 }
 0x152   : > { %v567_v12 = vand.u32 4294901760, %v566_v11 }
 0x154   : > { %568 = vmatmul.f32.vlgmr.msrb.gmra.mxu0 %v567_v12  ;;  %688 = vmatmul.f32.vlgmr.msra.gmra.mxu1 %v563_v8 }
 0x155   : > { %771 = vmatpush.msrb.mxu0 %v744_v17  ;;  %913 = vmatpush.msra.mxu1 %v912_v37 }
 0x157   : > { %919 = vmatpush.msra.mxu1 %v918_v55 }
 0x159   : > { %925 = vmatpush.msra.mxu1 %v924_v56 }
 0x15c   : > { %666 = vmatmul.f32.vlgmr.msra.gmra.mxu0 %v563_v8 }
 0x15d   : > { %881 = vmatpush.msra.mxu0 %v880_v26 }
 0x15f   : > { %883 = vmatpush.msra.mxu0 %v882_v47 }
 0x161   : > { %885 = vmatpush.msra.mxu0 %v884_v48 }
 0x1c9   : > { %v595_v22 = vpop.f32.mrf.mxu1 }
 0x1d1   : > { %v569_v23 = vpop.f32.mrf.mxu0  ;;  %v619_v15 = vpop.f32.mrf.mxu2 }
 0x1d2   : > { %v570_v13 = vadd.f32 %v569_v23, %v541_v18  ;;  %v689_v35 = vpop.f32.mrf.mxu1 }
 0x1d3   : > { %v643_v29 = vpop.f32.mrf.mxu3 }
 0x1d4   : > { %v596_v25 = vadd.f32 %v595_v22, %v570_v13 }
 0x1d6   : > { %v620_v27 = vadd.f32 %v619_v15, %v596_v25 }
 0x1d8   : > { %v644_v30 = vadd.f32 %v643_v29, %v620_v27 }
 0x1d9   : > { %v667_v32 = vpop.f32.mrf.mxu0 }
 0x1da   : > { %v668_v33 = vadd.f32 %v667_v32, %v644_v30 }
 0x1dc   : > { %v690_v36 = vadd.f32 %v689_v35, %v668_v33 }
 0x1de   : > { %v692_v38 = vmax.f32 %v690_v36, 0.0 }
 0x1e0   : > { %v700_v39 = vsel %vm202_vm0, %v692_v38, 0 }
 0x1e1   : > { %v719_v40 = vand.u32 4294901760, %v700_v39 }
 0x1e3   : > { %v720_v41 = vsub.f32 %v700_v39, %v719_v40  ;;  %750 = vmatmul.f32.vlgmr.msra.gmra.mxu3 %v719_v40 }
 0x1e4   : > { %973 = vmatpush.msra.mxu3 %v880_v26 }
 0x1e5   : > { %774 = vmatmul.f32.vlgmr.msrb.gmra.mxu0 %v720_v41  ;;  %v721_v42 = vand.u32 4294901760, %v720_v41 }
 0x1e6   : > { %975 = vmatpush.msra.mxu3 %v882_v47  ;;  %1001 = vmatpush.msrb.mxu0 %v910_v31 }
 0x1e7   : > { %798 = vmatmul.f32.vlgmr.msrb.gmra.mxu1 %v721_v42  ;;  %v722_v43 = vsub.f32 %v720_v41, %v721_v42 }
 0x1e8   : > { %977 = vmatpush.msra.mxu3 %v884_v48  ;;  %1005 = vmatpush.msrb.mxu0 %v916_v51 }
 0x1e9   : > { %v723_v44 = vand.u32 4294901760, %v722_v43  ;;  %1029 = vmatpush.msrb.mxu1 %v880_v26 }
 0x1ea   : > { %1009 = vmatpush.msrb.mxu0 %v922_v52 }
 0x1eb   : > { %724 = vmatmul.f32.vlgmr.msra.gmra.mxu2 %v723_v44  ;;  %844 = vmatmul.f32.vlgmr.msrb.gmra.mxu3 %v719_v40 }
 0x1ec   : > { %946 = vmatpush.msra.mxu2 %v909_v28  ;;  %1031 = vmatpush.msrb.mxu1 %v882_v47 }
 0x1ee   : > { %949 = vmatpush.msra.mxu2 %v915_v49  ;;  %1033 = vmatpush.msrb.mxu1 %v884_v48 }
 0x1f0   : > { %952 = vmatpush.msra.mxu2 %v921_v50 }
 0x1f3   : > { %822 = vmatmul.f32.vlgmr.msrb.gmra.mxu2 %v719_v40 }
 0x262   : > { %v775_v62 = vpop.f32.mrf.mxu0 }
 0x264   : > { %v799_v0 = vpop.f32.mrf.mxu1 }
 0x266   : > { %v751_v58 = vpop.f32.mrf.mxu3 }
 0x26e   : > { %v725_v59 = vpop.f32.mrf.mxu2  ;;  %v845_v4 = vpop.f32.mrf.mxu3 }
 0x26f   : > { %v726_v60 = vadd.f32 %v725_v59, %v697_v57 }
 0x271   : > { %v752_v61 = vadd.f32 %v751_v58, %v726_v60 }
 0x273   : > { %v776_v63 = vadd.f32 %v775_v62, %v752_v61 }
 0x275   : > { %v800_v1 = vadd.f32 %v799_v0, %v776_v63 }
 0x276   : > { %v823_v2 = vpop.f32.mrf.mxu2 }
 0x277   : > { %v824_v3 = vadd.f32 %v823_v2, %v800_v1 }
 0x279   : > { %v846_v5 = vadd.f32 %v845_v4, %v824_v3 }
 0x27b   : > { %v848_v6 = vmax.f32 %v846_v5, 0.0 }
 0x27d   : > { %v865_v7 = vsel %vm358_vm1, %v848_v6, 0 }
 0x27e   : > { %v886_v8 = vand.u32 4294901760, %v865_v7 }
 0x280   : > { %v887_v9 = vsub.f32 %v865_v7, %v886_v8  ;;  %927 = vmatmul.f32.vlgmr.msra.gmra.mxu1 %v886_v8 }
 0x282   : > { %955 = vmatmul.f32.vlgmr.msra.gmra.mxu2 %v887_v9  ;;  %v888_v10 = vand.u32 4294901760, %v887_v9 }
 0x284   : > { %981 = vmatmul.f32.vlgmr.msra.gmra.mxu3 %v888_v10  ;;  %v889_v11 = vsub.f32 %v887_v9, %v888_v10 }
 0x286   : > { %v890_v12 = vand.u32 4294901760, %v889_v11 }
 0x288   : > { %891 = vmatmul.f32.vlgmr.msra.gmra.mxu0 %v890_v12  ;;  %1035 = vmatmul.f32.vlgmr.msrb.gmra.mxu1 %v886_v8 }
 0x290   : > { %1011 = vmatmul.f32.vlgmr.msrb.gmra.mxu0 %v886_v8 }
 0x2fd   : > { %v928_v16 = vpop.f32.mrf.mxu1 }
 0x305   : > { %v892_v17 = vpop.f32.mrf.mxu0  ;;  %v956_v21 = vpop.f32.mrf.mxu2 }
 0x306   : > { %v893_v19 = vadd.f32 %v892_v17, %v862_v14  ;;  %v1036_v25 = vpop.f32.mrf.mxu1 }
 0x307   : > { %v982_v22 = vpop.f32.mrf.mxu3 }
 0x308   : > { %v929_v20 = vadd.f32 %v928_v16, %v893_v19 }
 0x30a   : > { %v957_v18 = vadd.f32 %v956_v21, %v929_v20 }
 0x30c   : > { %v983_v23 = vadd.f32 %v982_v22, %v957_v18 }
 0x30d   : > { %v1012_v13 = vpop.f32.mrf.mxu0 }
 0x30e   : > { %v1013_v24 = vadd.f32 %v1012_v13, %v983_v23 }
 0x310   : > { %v1037_v26 = vadd.f32 %v1036_v25, %v1013_v24 }
 0x312   : > { %1039 = vst.msk [vmem:[%s195_s21] sm:$0xff] %vm202_vm0, %v1037_v26 }
 0x313 PF: > { %s22_s19 = sadd.s32 1, %s1146_s19  }
 0x314   : > { %p19_p5 = scmp.ge.s32.totalorder %s22_s19, 18  }
 0x316   :  { %21 = sbr.rel (!%p19_p5) target bundleno = 7 (0x7), region = 65 }

</bundles_post_ra>
